<compile_context>
chip_gen: v7x
topology: tpu7x:2x2x1
jax: 0.10.0
libtpu: 0.0.40
codegen_flags: <defaults>
</compile_context>

<pallas_src>
import math
import jax
import jax.numpy as jnp
from jax.experimental import pallas as pl
from jax.experimental.pallas import tpu as pltpu


def _pos_cache_residue_kernel(x_ref, u_ref, vt_ref, o_ref):
    # Low-rank residual for this column tile: (F, R) @ (R, TILE_C) on the MXU,
    # f32 accumulation.  vt is already (rank, cache_size): no in-kernel transpose.
    residual = jnp.dot(
        u_ref[...], vt_ref[...], preferred_element_type=jnp.float32
    )
    new = x_ref[...].astype(jnp.float32) + residual

    # Column-wise L2 normalization over feat_dim (axis 0), matching
    # F.normalize(new, dim=0) with eps = 1e-12:
    #   out = new / max(||new||, 1e-12)  ==  new * rsqrt(max(sumsq, 1e-24))
    sumsq = jnp.sum(new * new, axis=0, keepdims=True)
    inv = jax.lax.rsqrt(jnp.maximum(sumsq, 1e-24))
    o_ref[...] = (new * inv).astype(o_ref.dtype)


def _choose_tile_c(cache_size, max_tile=512):
    """Largest lane-dense (multiple-of-128) tile that evenly divides cache_size.

    Capped at `max_tile` (512) so double-buffered x/out tiles stay well inside
    v7x's 64 MiB VMEM at realistic feat_dim.  Falls back to a full-extent block
    when cache_size has no suitable divisor (legal: block dim == array dim).
    """
    for t in (max_tile, 256, 128):
        if t <= cache_size and cache_size % t == 0:
            return t
    return cache_size


def positive_cache_residue(x, u_cache, v_cache, *, max_tile_c=512):
    """x: (feat_dim, cache_size); u_cache: (feat_dim, rank); v_cache: (cache_size, rank)."""
    feat_dim, cache_size = x.shape
    rank = u_cache.shape[1]
    assert u_cache.shape == (feat_dim, rank)
    assert v_cache.shape == (cache_size, rank)

    # One-time transpose outside the kernel (V is a cached parameter, so this
    # amortizes); the kernel then does a plain (F,R)@(R,C) matmul.
    v_t = jnp.transpose(v_cache)  # (rank, cache_size)

    tile_c = _choose_tile_c(cache_size, max_tile_c)
    grid = (cache_size // tile_c,)

    # VMEM budget estimate with headroom (double-buffered x/out/vt tiles +
    # resident U + f32 intermediates), clamped to sane bounds.
    itemsize = jnp.dtype(x.dtype).itemsize
    est = (
        2 * feat_dim * tile_c * itemsize        # x tiles (double-buffered)
        + 2 * feat_dim * tile_c * itemsize      # out tiles
        + 2 * rank * tile_c * itemsize          # vt tiles
        + 2 * feat_dim * rank * itemsize        # resident U
        + 2 * feat_dim * tile_c * 4             # f32 intermediates
    )
    vmem_limit = int(min(max(2 * est, 8 << 20), 48 << 20))

    return pl.pallas_call(
        _pos_cache_residue_kernel,
        out_shape=jax.ShapeDtypeStruct((feat_dim, cache_size), x.dtype),
        grid=grid,
        in_specs=[
            pl.BlockSpec((feat_dim, tile_c), lambda j: (0, j)),   # x: streamed columns
            pl.BlockSpec((feat_dim, rank), lambda j: (0, 0)),     # U: resident
            pl.BlockSpec((rank, tile_c), lambda j: (0, j)),       # V^T: streamed columns
        ],
        out_specs=pl.BlockSpec((feat_dim, tile_c), lambda j: (0, j)),
        compiler_params=pltpu.CompilerParams(
            dimension_semantics=("parallel",),
            vmem_limit_bytes=vmem_limit,
        ),
    )(x, u_cache, v_t)


def init_params(key, feat_dim, cache_size, rank, dtype=jnp.float32):
    """Deterministic parameter init matching PositiveCacheResidue.__init__."""
    # kaiming_uniform_(U, a=sqrt(5)) on shape (feat_dim, rank):
    #   fan_in = rank, gain = sqrt(2 / (1 + 5)) = sqrt(1/3)
    #   bound  = gain * sqrt(3 / fan_in) = 1 / sqrt(fan_in)
    bound = 1.0 / math.sqrt(rank)
    u_cache = jax.random.uniform(
        key, (feat_dim, rank), dtype=dtype, minval=-bound, maxval=bound
    )
    # V_cache is initialized to zeros in the module.
    v_cache = jnp.zeros((cache_size, rank), dtype=dtype)
    return u_cache, v_cache


def _reference(x, u, v):
    residual = u @ v.T
    new = x + residual
    norm = jnp.maximum(jnp.linalg.norm(new, axis=0, keepdims=True), 1e-12)
    return new / norm


if __name__ == "__main__":
    key = jax.random.PRNGKey(0)
    k_x, k_u, k_v, k_x2 = jax.random.split(key, 4)

    # ---- Tiled case: exercises the multi-step, lane-dense pipelined path. ----
    feat_dim, cache_size, rank = 128, 1024, 16
    x = jax.random.normal(k_x, (feat_dim, cache_size), dtype=jnp.float32)
    u_cache, v_cache = init_params(k_u, feat_dim, cache_size, rank)
    # Perturb V so the low-rank residual path is actually exercised
    # (module init gives V = 0, which would make residual identically zero).
    v_cache = v_cache + 0.1 * jax.random.normal(
        k_v, (cache_size, rank), dtype=jnp.float32
    )

    out = positive_cache_residue(x, u_cache, v_cache)
    out = jax.block_until_ready(out)
    ref = _reference(x, u_cache, v_cache)
    assert out.shape == (feat_dim, cache_size)
    assert jnp.allclose(out, ref, atol=1e-5, rtol=1e-5), "mismatch vs reference (tiled)"

    # ---- Tiny case (module-like toy shape): falls back to a single full block. ----
    f2, c2, r2 = 32, 16, 16
    x2 = jax.random.normal(k_x2, (f2, c2), dtype=jnp.float32)
    u2, v2 = init_params(k_u, f2, c2, r2)
    v2 = v2 + 0.1 * jax.random.normal(k_v, (c2, r2), dtype=jnp.float32)
    out2 = jax.block_until_ready(positive_cache_residue(x2, u2, v2))
    ref2 = _reference(x2, u2, v2)
    assert jnp.allclose(out2, ref2, atol=1e-5, rtol=1e-5), "mismatch vs reference (tiny)"

    print("KERNEL_OK")
</pallas_src>

<mosaic_0001>
module attributes {stable_mosaic.version = 11 : i64} {
  func.func @_pos_cache_residue_kernel(%arg0: i32, %arg1: memref<128x512xf32, #tpu.memory_space<vmem>>, %arg2: memref<128x16xf32, #tpu.memory_space<vmem>>, %arg3: memref<16x512xf32, #tpu.memory_space<vmem>>, %arg4: memref<128x512xf32, #tpu.memory_space<vmem>>) attributes {dimension_semantics = [#tpu.dimension_semantics<parallel>], iteration_bounds = array<i64: 2>, scalar_prefetch = 0 : i64, scratch_operands = 0 : i64, tpu.core_type = #tpu.core_type<tc>, window_params = [{transform_indices = @transform_0, window_bounds = array<i64: 128, 512>}, {pipeline_mode = #tpu.pipeline_mode<synchronous>, transform_indices = @transform_1, window_bounds = array<i64: 128, 16>}, {transform_indices = @transform_2, window_bounds = array<i64: 16, 512>}, {transform_indices = @transform_3, window_bounds = array<i64: 128, 512>}]} {
    %c0 = arith.constant 0 : index
    %c0_0 = arith.constant 0 : index
    %0 = vector.load %arg2[%c0, %c0_0] : memref<128x16xf32, #tpu.memory_space<vmem>>, vector<128x16xf32>
    %c0_1 = arith.constant 0 : index
    %c0_2 = arith.constant 0 : index
    %1 = vector.load %arg3[%c0_1, %c0_2] : memref<16x512xf32, #tpu.memory_space<vmem>>, vector<16x512xf32>
    %cst = arith.constant dense<0.000000e+00> : vector<128x512xf32>
    %2 = tpu.matmul %0, %1, %cst {dimension_numbers = #tpu.dot_dimension_numbers<[1], [0], [0], [1], [0, 0, 1, 1], [], []>} : vector<128x16xf32>, vector<16x512xf32>, vector<128x512xf32> -> vector<128x512xf32>
    %c0_3 = arith.constant 0 : index
    %c0_4 = arith.constant 0 : index
    %3 = vector.load %arg1[%c0_3, %c0_4] : memref<128x512xf32, #tpu.memory_space<vmem>>, vector<128x512xf32>
    %4 = arith.addf %3, %2 : vector<128x512xf32>
    %5 = arith.mulf %4, %4 : vector<128x512xf32>
    %cst_5 = arith.constant dense<0.000000e+00> : vector<512xf32>
    %6 = vector.multi_reduction <add>, %5, %cst_5 [0] : vector<128x512xf32> to vector<512xf32>
    %7 = vector.shape_cast %6 : vector<512xf32> to vector<1x512xf32>
    %cst_6 = arith.constant 1.000000e-24 : f32
    %8 = vector.broadcast %cst_6 : f32 to vector<1x512xf32>
    %9 = arith.maximumf %7, %8 : vector<1x512xf32>
    %10 = math.rsqrt %9 : vector<1x512xf32>
    %11 = vector.broadcast %10 : vector<1x512xf32> to vector<128x512xf32>
    %12 = arith.mulf %4, %11 : vector<128x512xf32>
    %c0_7 = arith.constant 0 : index
    %c0_8 = arith.constant 0 : index
    %13 = vector.load %arg4[%c0_7, %c0_8] : memref<128x512xf32, #tpu.memory_space<vmem>>, vector<128x512xf32>
    tpu.vector_store %arg4[%c0_7, %c0_8], %12 {strides = array<i32>} : memref<128x512xf32, #tpu.memory_space<vmem>>, vector<128x512xf32>,
    return
  }
  func.func @transform_0(%arg0: i32) -> (i32, i32) {
    %c0_i32 = arith.constant 0 : i32
    %c0_i32_0 = arith.constant 0 : i32
    return %c0_i32, %arg0 : i32, i32
  }
  func.func @transform_1(%arg0: i32) -> (i32, i32) {
    %c0_i32 = arith.constant 0 : i32
    %c0_i32_0 = arith.constant 0 : i32
    %c0_i32_1 = arith.constant 0 : i32
    return %c0_i32, %c0_i32_0 : i32, i32
  }
  func.func @transform_2(%arg0: i32) -> (i32, i32) {
    %c0_i32 = arith.constant 0 : i32
    %c0_i32_0 = arith.constant 0 : i32
    return %c0_i32, %arg0 : i32, i32
  }
  func.func @transform_3(%arg0: i32) -> (i32, i32) {
    %c0_i32 = arith.constant 0 : i32
    %c0_i32_0 = arith.constant 0 : i32
    return %c0_i32, %arg0 : i32, i32
  }
}

</mosaic_0001>

<bundles_post_ra>
// kernel: tpu_custom_call.1
= control target key start
LH: loop header
LB: loop body
LE: loop exit
PB: predicated region body
PF: predicated region fallthrough
CT: control target
= control target key end

     0   :  { %8 = vsyncpa [#allocation3], 0  ;;  %s2133_s0 = inlined_call_operand.hbm [shape: f32[128,1024], index: 0, kind: input, shape index: {}]   ;;  %s2134_s1 = inlined_call_operand.vmem [shape: f32[128,16], index: 1, kind: input, shape index: {}]   ;;  %s2135_s2 = inlined_call_operand.vmem [shape: f32[16,1024], index: 2, kind: input, shape index: {}]   ;;  %s2136_s3 = inlined_call_operand.hbm [shape: f32[128,1024], index: 3, kind: output, shape index: {}]  }
   0x1   :  { %10 = vsyncpa [#allocation3 + $0x1], 0 }
   0x2   :  { %11 = vsyncpa [#allocation4], 0 }
   0x3   :  { %13 = vsyncpa [#allocation4 + $0x1], 0  ;;  %s1400_s12 = smov 0   ;;  %s1402_s13 = smov 0  }
   0x4   :  { %s1404_s14 = smov 0   ;;  %s1406_s15 = smov 0  }
   0x5 LB: > { %s1421_s16 = sadd.s32 4294967295, %s1369_s15   ;;  %s1158_s17 = sadd.s32 4294967294, %s1369_s15   ;;  %s1369_s15 = sphi %s1406_s15, %s2230_s15   ;;  %s1365_s14 = sphi %s1404_s14, %s2229_s14   ;;  %s1361_s13 = sphi %s1402_s13, %s2228_s13   ;;  %s1357_s12 = sphi %s1400_s12, %s2227_s12  }
   0x6   : > { %s1425_s18 = sadd.s32 1, %s1369_s15   ;;  %s26_s19 = sadd.s32 1, %s1365_s14 }
   0x7   : > { %s23_s20 = ssub.s32 %s1369_s15, %s1425_s18  ;;  %p33_p0 = scmp.ne.s32.totalorder %s1365_s14, %s1361_s13 }
   0x8   : > { %p24_p1 = scmp.eq.s32.totalorder %s23_s20, 0  ;;  %p34_p2 = scmp.eq.s32.totalorder %s1369_s15, 0 }
   0x9   : > { %p39_p3 = scmp.ne.s32.totalorder %s1361_s13, %s1357_s12  ;;  %p40_p4 = scmp.eq.s32.totalorder %s1421_s16, 0 }
   0xa   : > { %s1437_s21 = scalar_select %p24_p1, %s1365_s14, %s26_s19  }
   0xb   : > { %p1439_p5 = por %p34_p2, %p33_p0  ;;  %p1443_p6 = por %p40_p4, %p39_p3 }
   0xc   : > { %p110_p7 = scmp.eq.s32.totalorder %s1421_s16, 1  ;;  %p116_p8 = scmp.eq.s32.totalorder %s1158_s17, 1 }
   0xd   : > { %p2137_p11 = scmp.ge.s32.totalorder %s1369_s15, 2 }
   0xe   : > { %p1448_p9 = por %p110_p7, %p33_p0  ;;  %p1452_p10 = por %p116_p8, %p39_p3 }
   0xf   : > { %135 = sbr.rel (%p2137_p11) target bundleno = 52 (0x34), region = 20  ;;  %s1460_s26 = sand.u32 (!%p2137_p11), 1, %s1365_s14  }
  0x10   : > { %s2168_s24 = scalar_select %p1448_p9, 1, 0 }
  0x11   : > { %s2169_s25 = scalar_select %p1452_p10, 1, 0 }
  0x12   : > { %s1208_s27 = sshll.u32 (!%p2137_p11), %s1369_s15, 9  ;;  %s1161_s28 = sshll.u32 (!%p2137_p11), %s1460_s26, 9 }
  0x13   : > { %s1467_s4 = scalar_lea.hbm (!%p2137_p11), %s2133_s0, %s1208_s27  ;;  %s143_s5 = scalar_lea.vmem (!%p2137_p11), [#allocation2], %s1161_s28 }
  0x14   : > { %s150_s6 = sshll.u32 (!%p2137_p11), %s143_s5, 4  ;;  %s140_s7 = scalar_lea.sflag (!%p2137_p11), [#allocation3], %s1460_s26  ;;  %s1469_s6 = int_to_ptr.vmem [resolvable:$true] %s150_s6 }
  0x15   : > { %s1275_s8 = scalar_lea.hbm (!%p2137_p11), %s1467_s4, 8192  ;;  %s1279_s11 = scalar_lea.hbm (!%p2137_p11), %s2133_s0, 16384 }
  0x16   : > { %p1276_p12 = scmp.ne.s32.totalorder %s1467_s4, %s1275_s8  ;;  %p1280_p1 = scmp.lt.u32.totalorder %s1467_s4, %s2133_s0 }
  0x17   : > { %p1281_p2 = scmp.lt.u32.totalorder %s1279_s11, %s1275_s8  ;;  %p1283_p4 = scmp.lt.u32.totalorder %s1275_s8, %s1467_s4 }
  0x18   : > { %p1277_p13 = pnand %p1276_p12, %p1439_p5 }
  0x19   : > { %p1282_p3 = por %p1281_p2, %p1280_p1 }
  0x1a   : > { %p1278_p0 = pneg %p1277_p13 }
  0x1b   : > { %p1284_p7 = por %p1283_p4, %p1282_p3 }
  0x1d   : > { %p1285_p8 = pnand %p1284_p7, %p1278_p0 }
  0x1f   : > { %1288 = shalt.err (!%p1285_p8)
}
  0x20   : > { %s1289_s20 = scalar_lea.vmem %s1469_s6, 8192  ;;  %s1371_s27 = smov [#allocation2]  }
  0x21   : > { %p1290_p12 = scmp.ne.s32.totalorder %s1469_s6, %s1289_s20  ;;  %s1293_s28 = sshll.u32 %s1371_s27, 4  ;;  %s1294_s28 = int_to_ptr.vmem [resolvable:$false] %s1293_s28 }
  0x22   : > { %s1295_s29 = scalar_lea.vmem %s1294_s28, 16384  ;;  %p1296_p10 = scmp.lt.s32.totalorder %s1469_s6, %s1294_s28 }
  0x23   : > { %p1291_p13 = pnand %p1290_p12, %p1439_p5  ;;  %p1297_p9 = scmp.lt.s32.totalorder %s1295_s29, %s1289_s20 }
  0x25   : > { %p1292_p11 = pneg %p1291_p13  ;;  %p1298_p1 = por %p1297_p9, %p1296_p10 }
  0x27   : > { %p1299_p2 = pnand %p1298_p1, %p1292_p11 }
  0x29   : > { %1302 = shalt.err (!%p1299_p2)
}
  0x2a   : > { %s1372_s30 = smov 1024   ;;  %s1373_s5 = smov 512  }
  0x2b   : > { %s1374_s8 = smov 32   ;;  %159 = sbr.rel (!%p1439_p5) target bundleno = 52 (0x34), region = 28 }
  0x2c   : > { %1219 = dma.hbm_to_vmem [thread:$0]  (%p1439_p5), %s1467_s4, 8192, %s1469_s6, %s140_s7, %s1372_s30, %s1373_s5, %s1374_s8  }
  0x2d   : > { %s1164_s9 = sshll.u32 (%p1439_p5), %s1460_s26, 6  ;;  %s1209_s10 = sshll.u32 (%p1439_p5), %s1369_s15, 5 }
  0x2e   : > { %s166_s19 = scalar_lea.vmem (%p1439_p5), %s2135_s2, %s1209_s10  ;;  %s163_s20 = scalar_lea.vmem (%p1439_p5), [#allocation5], %s1164_s9 }
  0x2f   : > { %v179_v0 = vld [vmem:[%s166_s19] sm:$0xff] (%p1439_p5)  ;;  %v181_v1 = vld [vmem:[%s166_s19 + $0x8] sm:$0xff] (%p1439_p5)  ;;  %v183_v2 = vld [vmem:[%s166_s19 + $0x10] sm:$0xff] (%p1439_p5) }
  0x30   : > { %180 = vst [vmem:[%s163_s20] sm:$0xff] (%p1439_p5), %v179_v0  ;;  %182 = vst [vmem:[%s163_s20 + $0x8] sm:$0xff] (%p1439_p5), %v181_v1  ;;  %v185_v3 = vld [vmem:[%s166_s19 + $0x18] sm:$0xff] (%p1439_p5)  ;;  %v187_v4 = vld [vmem:[%s166_s19 + $0x40] sm:$0xff] (%p1439_p5) }
  0x31   : > { %184 = vst [vmem:[%s163_s20 + $0x10] sm:$0xff] (%p1439_p5), %v183_v2  ;;  %v189_v5 = vld [vmem:[%s166_s19 + $0x48] sm:$0xff] (%p1439_p5)  ;;  %186 = vst [vmem:[%s163_s20 + $0x18] sm:$0xff] (%p1439_p5), %v185_v3  ;;  %v191_v6 = vld [vmem:[%s166_s19 + $0x50] sm:$0xff] (%p1439_p5) }
  0x32   : > { %188 = vst [vmem:[%s163_s20 + $0x20] sm:$0xff] %v187_v4  ;;  %190 = vst [vmem:[%s163_s20 + $0x28] sm:$0xff] %v189_v5  ;;  %v193_v7 = vld [vmem:[%s166_s19 + $0x58] sm:$0xff] }
  0x33   : > { %192 = vst [vmem:[%s163_s20 + $0x30] sm:$0xff] %v191_v6  ;;  %194 = vst [vmem:[%s163_s20 + $0x38] sm:$0xff] %v193_v7 }
  0x34 PF: > { %p1167_p5 = scmp.ge.s32.totalorder %s1369_s15, 1  ;;  %p199_p9 = scmp.lt.s32.totalorder %s1369_s15, 3 }
  0x36   : > { %p200_p10 = pnand %p1167_p5, %p199_p9 }
  0x38   : > { %203 = sbr.rel (%p200_p10) target bundleno = 430 (0x1ae), region = 51 }
  0x3f   : > { %s1505_s22 = sand.u32 1, %s1361_s13  }
  0x40   : > { %s1168_s26 = sshll.u32 %s1505_s22, 9  ;;  %s206_s4 = scalar_lea.sflag [#allocation3], %s1505_s22 }
  0x41   : > { %s1511_s6 = scalar_lea.vmem [#allocation2], %s1168_s26 }
  0x42   : > { %1348 = dma.done.wait (%p1443_p6), %s206_s4, 8192  }
  0x43   : > { %1350 = vsyncadd (%p1443_p6), %s206_s4, 4294959104  ;;  %s1169_s7 = sshll.u32 %s1505_s22, 6  ;;  %v1375_v8 = vmov 0.0   ;;  %v246_v21 = vld [vmem:[%s2134_s1] sm:$0xff]  ;;  %vm270_vm0 = vcmask 130048   ;;  %v247_v22 = vld [vmem:[%s2134_s1 + $0x8] sm:$0xff] }
  0x44   : > { %383 = vmatprep.mubr.f32.mxu0 %v1375_v8  ;;  %544 = vmatprep.mubr.f32.mxu1 %v1375_v8  ;;  %s217_s27 = scalar_lea.vmem [#allocation5], %s1169_s7  ;;  %v248_v23 = vld [vmem:[%s2134_s1 + $0x10] sm:$0xff]  ;;  %v249_v24 = vld [vmem:[%s2134_s1 + $0x18] sm:$0xff]  ;;  %v250_v25 = vld [vmem:[%s2134_s1 + $0x20] sm:$0xff]  ;;  %s1054_s8 = scalar_lea.sflag [#allocation4], %s1505_s22 }
  0x45   : > { %v263_v9 = vld [vmem:[%s217_s27 + $0x8] sm:$0xff]  ;;  %v265_v11 = vld [vmem:[%s217_s27 + $0x18] sm:$0xff]  ;;  %v262_v14 = vld [vmem:[%s217_s27] sm:$0xff]  ;;  %p2224_p11 = scmp.ne.s32.totalorder %s2168_s24, 0  ;;  %s1376_s10 = smov [#allocation6]  }
  0x46   : > { %v267_v10 = vld [vmem:[%s217_s27 + $0x28] sm:$0xff]  ;;  %v269_v13 = vld [vmem:[%s217_s27 + $0x38] sm:$0xff]  ;;  %v266_v15 = vld [vmem:[%s217_s27 + $0x20] sm:$0xff]  ;;  %s1307_s11 = sshll.u32 %s1376_s10, 4  ;;  %s1308_s11 = int_to_ptr.vmem [resolvable:$false] %s1307_s11 }
  0x47   : > { %v1211_v12 = vpack.c.bf16 %v267_v10, %v263_v9  ;;  %v1215_v16 = vpack.c.bf16 %v269_v13, %v265_v11  ;;  %v1213_v17 = vpack.c.bf16 %v266_v15, %v262_v14  ;;  %v264_v18 = vld [vmem:[%s217_s27 + $0x10] sm:$0xff]  ;;  %v251_v26 = vld [vmem:[%s2134_s1 + $0x28] sm:$0xff]  ;;  %v253_v28 = vld [vmem:[%s2134_s1 + $0x38] sm:$0xff]  ;;  %s1309_s17 = scalar_lea.vmem %s1308_s11, 16384 }
  0x48   : > { %v268_v19 = vld [vmem:[%s217_s27 + $0x30] sm:$0xff]  ;;  %v254_v29 = vld [vmem:[%s2134_s1 + $0x40] sm:$0xff]  ;;  %v255_v30 = vld [vmem:[%s2134_s1 + $0x48] sm:$0xff] }
  0x49   : > { %1212 = vmatprep.subr.bf16.mxu0 %v1211_v12  ;;  %v1217_v20 = vpack.c.bf16 %v268_v19, %v264_v18  ;;  %1216 = vmatprep.subr.bf16.mxu1 %v1215_v16  ;;  %v252_v27 = vld [vmem:[%s2134_s1 + $0x30] sm:$0xff]  ;;  %v257_v32 = vld [vmem:[%s2134_s1 + $0x58] sm:$0xff]  ;;  %v258_v33 = vld [vmem:[%s2134_s1 + $0x60] sm:$0xff] }
  0x4a   : > { %1214 = vmatpush1.bf16.msra.mxu0 %v1213_v17  ;;  %v256_v31 = vld [vmem:[%s2134_s1 + $0x50] sm:$0xff]  ;;  %v259_v34 = vld [vmem:[%s2134_s1 + $0x68] sm:$0xff]  ;;  %v261_v36 = vld [vmem:[%s2134_s1 + $0x78] sm:$0xff] }
  0x4b   : > { %1218 = vmatpush1.bf16.msra.mxu1 %v1217_v20  ;;  %v260_v35 = vld [vmem:[%s2134_s1 + $0x70] sm:$0xff]  ;;  %v641_v38 = vld [vmem:[%s1511_s6] sm:$0xff]  ;;  %v642_v42 = vld [vmem:[%s1511_s6 + $0x8] sm:$0xff] }
  0x4c   : > { %v643_v40 = vld [vmem:[%s1511_s6 + $0x10] sm:$0xff]  ;;  %v644_v44 = vld [vmem:[%s1511_s6 + $0x18] sm:$0xff]  ;;  %v645_v45 = vld [vmem:[%s1511_s6 + $0x20] sm:$0xff] }
  0x4d   : > { %1171 = vmatmul.mubr.msk.f32.vlgmr.msra.gmra.mrb[0].mxu0 %vm270_vm0, %v246_v21  ;;  %v647_v47 = vld [vmem:[%s1511_s6 + $0x30] sm:$0xff]  ;;  %v646_v48 = vld [vmem:[%s1511_s6 + $0x28] sm:$0xff]  ;;  %v648_v52 = vld [vmem:[%s1511_s6 + $0x38] sm:$0xff] }
  0x4e   : > { %1187 = vmatmul.mubr.msk.f32.vlgmr.msra.gmra.mrb[0].mxu1 %vm270_vm0, %v246_v21  ;;  %389 = vmatprep.mubr.f32.mxu0 %v1375_v8  ;;  %v649_v60 = vld [vmem:[%s1511_s6 + $0x40] sm:$0xff]  ;;  %v651_v0 = vld [vmem:[%s1511_s6 + $0x50] sm:$0xff]  ;;  %v650_v1 = vld [vmem:[%s1511_s6 + $0x48] sm:$0xff] }
  0x4f   : > { %550 = vmatprep.mubr.f32.mxu1 %v1375_v8  ;;  %v652_v7 = vld [vmem:[%s1511_s6 + $0x58] sm:$0xff]  ;;  %v653_v19 = vld [vmem:[%s1511_s6 + $0x60] sm:$0xff] }
  0x51   : > { %1172 = vmatmul.mubr.msk.f32.gmra.mrb[2].mxu0 %vm270_vm0, %v247_v22 }
  0x52   : > { %1188 = vmatmul.mubr.msk.f32.gmra.mrb[2].mxu1 %vm270_vm0, %v247_v22  ;;  %395 = vmatprep.mubr.f32.mxu0 %v1375_v8 }
  0x53   : > { %556 = vmatprep.mubr.f32.mxu1 %v1375_v8 }
  0x55   : > { %1173 = vmatmul.mubr.msk.f32.gmra.mrb[4].mxu0 %vm270_vm0, %v248_v23 }
  0x56   : > { %1189 = vmatmul.mubr.msk.f32.gmra.mrb[4].mxu1 %vm270_vm0, %v248_v23  ;;  %401 = vmatprep.mubr.f32.mxu0 %v1375_v8  ;;  %v655_v23 = vld [vmem:[%s1511_s6 + $0x70] sm:$0xff] }
  0x57   : > { %562 = vmatprep.mubr.f32.mxu1 %v1375_v8 }
  0x59   : > { %1174 = vmatmul.mubr.msk.f32.gmra.mrb[6].mxu0 %vm270_vm0, %v249_v24 }
  0x5a   : > { %1190 = vmatmul.mubr.msk.f32.gmra.mrb[6].mxu1 %vm270_vm0, %v249_v24  ;;  %407 = vmatprep.mubr.f32.mxu0 %v1375_v8  ;;  %v654_v24 = vld [vmem:[%s1511_s6 + $0x68] sm:$0xff] }
  0x5b   : > { %568 = vmatprep.mubr.f32.mxu1 %v1375_v8 }
  0x5d   : > { %1175 = vmatmul.mubr.msk.f32.gmra.mrb[8].mxu0 %vm270_vm0, %v250_v25 }
  0x5e   : > { %1191 = vmatmul.mubr.msk.f32.gmra.mrb[8].mxu1 %vm270_vm0, %v250_v25  ;;  %413 = vmatprep.mubr.f32.mxu0 %v1375_v8 }
  0x5f   : > { %574 = vmatprep.mubr.f32.mxu1 %v1375_v8 }
  0x61   : > { %1176 = vmatmul.mubr.msk.f32.gmra.mrb[10].mxu0 %vm270_vm0, %v251_v26 }
  0x62   : > { %1192 = vmatmul.mubr.msk.f32.gmra.mrb[10].mxu1 %vm270_vm0, %v251_v26  ;;  %419 = vmatprep.mubr.f32.mxu0 %v1375_v8 }
  0x63   : > { %580 = vmatprep.mubr.f32.mxu1 %v1375_v8 }
  0x65   : > { %1177 = vmatmul.mubr.msk.f32.gmra.mrb[12].mxu0 %vm270_vm0, %v252_v27 }
  0x66   : > { %1193 = vmatmul.mubr.msk.f32.gmra.mrb[12].mxu1 %vm270_vm0, %v252_v27  ;;  %425 = vmatprep.mubr.f32.mxu0 %v1375_v8 }
  0x67   : > { %586 = vmatprep.mubr.f32.mxu1 %v1375_v8 }
  0x69   : > { %1178 = vmatmul.mubr.msk.f32.gmra.mrb[14].mxu0 %vm270_vm0, %v253_v28 }
  0x6a   : > { %1194 = vmatmul.mubr.msk.f32.gmra.mrb[14].mxu1 %vm270_vm0, %v253_v28  ;;  %431 = vmatprep.mubr.f32.mxu0 %v1375_v8  ;;  %v656_v28 = vld [vmem:[%s1511_s6 + $0x78] sm:$0xff] }
  0x6b   : > { %592 = vmatprep.mubr.f32.mxu1 %v1375_v8 }
  0x6d   : > { %1179 = vmatmul.mubr.msk.f32.gmra.mrb[16].mxu0 %vm270_vm0, %v254_v29 }
  0x6e   : > { %1195 = vmatmul.mubr.msk.f32.gmra.mrb[16].mxu1 %vm270_vm0, %v254_v29  ;;  %437 = vmatprep.mubr.f32.mxu0 %v1375_v8 }
  0x6f   : > { %598 = vmatprep.mubr.f32.mxu1 %v1375_v8 }
  0x71   : > { %1180 = vmatmul.mubr.msk.f32.gmra.mrb[18].mxu0 %vm270_vm0, %v255_v30 }
  0x72   : > { %1196 = vmatmul.mubr.msk.f32.gmra.mrb[18].mxu1 %vm270_vm0, %v255_v30  ;;  %443 = vmatprep.mubr.f32.mxu0 %v1375_v8 }
  0x73   : > { %604 = vmatprep.mubr.f32.mxu1 %v1375_v8 }
  0x75   : > { %1181 = vmatmul.mubr.msk.f32.gmra.mrb[20].mxu0 %vm270_vm0, %v256_v31 }
  0x76   : > { %1197 = vmatmul.mubr.msk.f32.gmra.mrb[20].mxu1 %vm270_vm0, %v256_v31  ;;  %449 = vmatprep.mubr.f32.mxu0 %v1375_v8 }
  0x77   : > { %610 = vmatprep.mubr.f32.mxu1 %v1375_v8 }
  0x79   : > { %1182 = vmatmul.mubr.msk.f32.gmra.mrb[22].mxu0 %vm270_vm0, %v257_v32 }
  0x7a   : > { %1198 = vmatmul.mubr.msk.f32.gmra.mrb[22].mxu1 %vm270_vm0, %v257_v32  ;;  %455 = vmatprep.mubr.f32.mxu0 %v1375_v8 }
  0x7b   : > { %616 = vmatprep.mubr.f32.mxu1 %v1375_v8 }
  0x7d   : > { %1183 = vmatmul.mubr.msk.f32.gmra.mrb[24].mxu0 %vm270_vm0, %v258_v33 }
  0x7e   : > { %1199 = vmatmul.mubr.msk.f32.gmra.mrb[24].mxu1 %vm270_vm0, %v258_v33  ;;  %461 = vmatprep.mubr.f32.mxu0 %v1375_v8 }
  0x7f   : > { %622 = vmatprep.mubr.f32.mxu1 %v1375_v8 }
  0x81   : > { %1184 = vmatmul.mubr.msk.f32.gmra.mrb[26].mxu0 %vm270_vm0, %v259_v34 }
  0x82   : > { %1200 = vmatmul.mubr.msk.f32.gmra.mrb[26].mxu1 %vm270_vm0, %v259_v34  ;;  %467 = vmatprep.mubr.f32.mxu0 %v1375_v8 }
  0x83   : > { %628 = vmatprep.mubr.f32.mxu1 %v1375_v8 }
  0x85   : > { %1185 = vmatmul.mubr.msk.f32.gmra.mrb[28].mxu0 %vm270_vm0, %v260_v35 }
  0x86   : > { %1201 = vmatmul.mubr.msk.f32.gmra.mrb[28].mxu1 %vm270_vm0, %v260_v35  ;;  %473 = vmatprep.mubr.f32.mxu0 %v1375_v8 }
  0x87   : > { %634 = vmatprep.mubr.f32.mxu1 %v1375_v8 }
  0x89   : > { %1186 = vmatmul.mubr.msk.f32.gmra.mrb[30].mxu0 %vm270_vm0, %v261_v36 }
  0x8a   : > { %1202 = vmatmul.mubr.msk.f32.gmra.mrb[30].mxu1 %vm270_vm0, %v261_v36 }
 0x120   : > { %v385_v37 = vpop.f32.mrb[0].mxu0 }
 0x121   : > { %v546_v39 = vpop.f32.mrb[0].mxu1  ;;  %v387_v41 = vpop.f32.mrb[1].mxu0  ;;  %v1635_v46 = vadd.f32 %v641_v38, %v385_v37 }
 0x122   : > { %v548_v43 = vpop.f32.mrb[1].mxu1  ;;  %v1639_v49 = vadd.f32 %v643_v40, %v546_v39  ;;  %v1641_v50 = vadd.f32 %v642_v42, %v387_v41  ;;  %v657_v39 = vld [vmem:[%s1511_s6 + $0x80] sm:$0xff] }
 0x123   : > { %v1644_v53 = vadd.f32 %v644_v44, %v548_v43  ;;  %v769_v61 = vmul.f32 %v1635_v46, %v1635_v46  ;;  %v659_v43 = vld [vmem:[%s1511_s6 + $0x90] sm:$0xff]  ;;  %v658_v44 = vld [vmem:[%s1511_s6 + $0x88] sm:$0xff] }
 0x124   : > { %v391_v51 = vpop.f32.mrb[2].mxu0  ;;  %v771_v2 = vmul.f32 %v1639_v49, %v1639_v49  ;;  %v770_v3 = vmul.f32 %v1641_v50, %v1641_v50 }
 0x125   : > { %2170 = vst [vmem:[#allocation9_spill] sm:$0xff] %v1644_v53  ;;  %v1646_v54 = vadd.f32 %v645_v45, %v391_v51  ;;  %v552_v55 = vpop.f32.mrb[2].mxu1  ;;  %v393_v56 = vpop.f32.mrb[3].mxu0  ;;  %v772_v8 = vmul.f32 %v1644_v53, %v1644_v53  ;;  %v660_v51 = vld [vmem:[%s1511_s6 + $0x98] sm:$0xff] }
 0x126   : > { %v1648_v57 = vadd.f32 %v647_v47, %v552_v55  ;;  %v1650_v58 = vadd.f32 %v646_v48, %v393_v56  ;;  %v554_v59 = vpop.f32.mrb[3].mxu1 }
 0x127   : > { %v773_v62 = vmul.f32 %v1646_v54, %v1646_v54  ;;  %v1657_v63 = vadd.f32 %v648_v52, %v554_v59 }
 0x128   : > { %v775_v4 = vmul.f32 %v1648_v57, %v1648_v57  ;;  %v774_v5 = vmul.f32 %v1650_v58, %v1650_v58  ;;  %v397_v6 = vpop.f32.mrb[4].mxu0 }
 0x129   : > { %2171 = vst [vmem:[#allocation10_spill] sm:$0xff] %v1657_v63  ;;  %v833_v9 = vadd.f32 %v773_v62, %v769_v61  ;;  %v776_v10 = vmul.f32 %v1657_v63, %v1657_v63  ;;  %v1674_v11 = vadd.f32 %v649_v60, %v397_v6  ;;  %v558_v12 = vpop.f32.mrb[4].mxu1  ;;  %v399_v13 = vpop.f32.mrb[5].mxu0  ;;  %v697_v63 = vld [vmem:[%s1511_s6 + $0x1c0] sm:$0xff] }
 0x12a   : > { %v875_v14 = vadd.f32 %v775_v4, %v771_v2  ;;  %v854_v15 = vadd.f32 %v774_v5, %v770_v3  ;;  %v1676_v16 = vadd.f32 %v651_v0, %v558_v12  ;;  %v1678_v17 = vadd.f32 %v650_v1, %v399_v13  ;;  %v560_v18 = vpop.f32.mrb[5].mxu1  ;;  %v661_v3 = vld [vmem:[%s1511_s6 + $0xa0] sm:$0xff]  ;;  %v664_v13 = vld [vmem:[%s1511_s6 + $0xb8] sm:$0xff] }
 0x12b   : > { %v896_v20 = vadd.f32 %v776_v10, %v772_v8  ;;  %v777_v21 = vmul.f32 %v1674_v11, %v1674_v11  ;;  %v1683_v22 = vadd.f32 %v652_v7, %v560_v18  ;;  %v663_v7 = vld [vmem:[%s1511_s6 + $0xb0] sm:$0xff]  ;;  %v662_v8 = vld [vmem:[%s1511_s6 + $0xa8] sm:$0xff] }
 0x12c   : > { %v779_v25 = vmul.f32 %v1676_v16, %v1676_v16  ;;  %v778_v26 = vmul.f32 %v1678_v17, %v1678_v17  ;;  %v403_v27 = vpop.f32.mrb[6].mxu0 }
 0x12d   : > { %2172 = vst [vmem:[#allocation11_spill] sm:$0xff] %v1683_v22  ;;  %v834_v29 = vadd.f32 %v833_v9, %v777_v21  ;;  %v780_v30 = vmul.f32 %v1683_v22, %v1683_v22  ;;  %v1694_v31 = vadd.f32 %v653_v19, %v403_v27  ;;  %v564_v32 = vpop.f32.mrb[6].mxu1  ;;  %v405_v33 = vpop.f32.mrb[7].mxu0  ;;  %v665_v27 = vld [vmem:[%s1511_s6 + $0xc0] sm:$0xff] }
 0x12e   : > { %v876_v34 = vadd.f32 %v875_v14, %v779_v25  ;;  %v855_v35 = vadd.f32 %v854_v15, %v778_v26  ;;  %v1696_v36 = vadd.f32 %v655_v23, %v564_v32  ;;  %v1698_v37 = vadd.f32 %v654_v24, %v405_v33  ;;  %v566_v38 = vpop.f32.mrb[7].mxu1  ;;  %v667_v32 = vld [vmem:[%s1511_s6 + $0xd0] sm:$0xff]  ;;  %v666_v33 = vld [vmem:[%s1511_s6 + $0xc8] sm:$0xff] }
 0x12f   : > { %v897_v40 = vadd.f32 %v896_v20, %v780_v30  ;;  %v781_v41 = vmul.f32 %v1694_v31, %v1694_v31  ;;  %v1703_v42 = vadd.f32 %v656_v28, %v566_v38 }
 0x130   : > { %v783_v45 = vmul.f32 %v1696_v36, %v1696_v36  ;;  %v782_v47 = vmul.f32 %v1698_v37, %v1698_v37  ;;  %v409_v48 = vpop.f32.mrb[8].mxu0 }
 0x131   : > { %2173 = vst [vmem:[#allocation12_spill] sm:$0xff] %v1703_v42  ;;  %v835_v52 = vadd.f32 %v834_v29, %v781_v41  ;;  %v784_v55 = vmul.f32 %v1703_v42, %v1703_v42  ;;  %v1714_v56 = vadd.f32 %v657_v39, %v409_v48  ;;  %v570_v59 = vpop.f32.mrb[8].mxu1  ;;  %v411_v60 = vpop.f32.mrb[9].mxu0  ;;  %v668_v39 = vld [vmem:[%s1511_s6 + $0xd8] sm:$0xff] }
 0x132   : > { %v877_v61 = vadd.f32 %v876_v34, %v783_v45  ;;  %v856_v62 = vadd.f32 %v855_v35, %v782_v47  ;;  %v1716_v0 = vadd.f32 %v659_v43, %v570_v59  ;;  %v1718_v1 = vadd.f32 %v658_v44, %v411_v60  ;;  %v572_v2 = vpop.f32.mrb[9].mxu1  ;;  %v669_v59 = vld [vmem:[%s1511_s6 + $0xe0] sm:$0xff] }
 0x133   : > { %v898_v4 = vadd.f32 %v897_v40, %v784_v55  ;;  %v785_v5 = vmul.f32 %v1714_v56, %v1714_v56  ;;  %v1723_v6 = vadd.f32 %v660_v51, %v572_v2  ;;  %v671_v2 = vld [vmem:[%s1511_s6 + $0xf0] sm:$0xff] }
 0x134   : > { %v787_v9 = vmul.f32 %v1716_v0, %v1716_v0  ;;  %v786_v10 = vmul.f32 %v1718_v1, %v1718_v1  ;;  %v415_v12 = vpop.f32.mrb[10].mxu0 }
 0x135   : > { %2174 = vst [vmem:[#allocation13_spill] sm:$0xff] %v1723_v6  ;;  %v836_v14 = vadd.f32 %v835_v52, %v785_v5  ;;  %v788_v15 = vmul.f32 %v1723_v6, %v1723_v6  ;;  %v1734_v18 = vadd.f32 %v661_v3, %v415_v12  ;;  %v576_v19 = vpop.f32.mrb[10].mxu1  ;;  %v417_v20 = vpop.f32.mrb[11].mxu0  ;;  %v670_v3 = vld [vmem:[%s1511_s6 + $0xe8] sm:$0xff]  ;;  %v693_v6 = vld [vmem:[%s1511_s6 + $0x1a0] sm:$0xff] }
 0x136   : > { %v878_v21 = vadd.f32 %v877_v61, %v787_v9  ;;  %v857_v23 = vadd.f32 %v856_v62, %v786_v10  ;;  %v1736_v24 = vadd.f32 %v663_v7, %v576_v19  ;;  %v1738_v25 = vadd.f32 %v662_v8, %v417_v20  ;;  %v578_v26 = vpop.f32.mrb[11].mxu1  ;;  %v672_v8 = vld [vmem:[%s1511_s6 + $0xf8] sm:$0xff] }
 0x137   : > { %v899_v28 = vadd.f32 %v898_v4, %v788_v15  ;;  %v789_v29 = vmul.f32 %v1734_v18, %v1734_v18  ;;  %v1743_v30 = vadd.f32 %v664_v13, %v578_v26  ;;  %v673_v26 = vld [vmem:[%s1511_s6 + $0x100] sm:$0xff] }
 0x138   : > { %2175 = vst [vmem:[#allocation14_spill] sm:$0xff] %v1738_v25  ;;  %v791_v34 = vmul.f32 %v1736_v24, %v1736_v24  ;;  %v790_v35 = vmul.f32 %v1738_v25, %v1738_v25  ;;  %v421_v38 = vpop.f32.mrb[12].mxu0 }
 0x139   : > { %2176 = vst [vmem:[#allocation15_spill] sm:$0xff] %v1743_v30  ;;  %v837_v40 = vadd.f32 %v836_v14, %v789_v29  ;;  %v792_v41 = vmul.f32 %v1743_v30, %v1743_v30  ;;  %v1754_v43 = vadd.f32 %v665_v27, %v421_v38  ;;  %v582_v44 = vpop.f32.mrb[12].mxu1  ;;  %v423_v45 = vpop.f32.mrb[13].mxu0 }
 0x13a   : > { %v879_v47 = vadd.f32 %v878_v21, %v791_v34  ;;  %v858_v48 = vadd.f32 %v857_v23, %v790_v35  ;;  %v1756_v51 = vadd.f32 %v667_v32, %v582_v44  ;;  %v1758_v52 = vadd.f32 %v666_v33, %v423_v45  ;;  %v584_v55 = vpop.f32.mrb[13].mxu1  ;;  %v675_v32 = vld [vmem:[%s1511_s6 + $0x110] sm:$0xff]  ;;  %v674_v33 = vld [vmem:[%s1511_s6 + $0x108] sm:$0xff] }
 0x13b   : > { %v900_v60 = vadd.f32 %v899_v28, %v792_v41  ;;  %v793_v61 = vmul.f32 %v1754_v43, %v1754_v43  ;;  %v1763_v62 = vadd.f32 %v668_v39, %v584_v55  ;;  %v676_v39 = vld [vmem:[%s1511_s6 + $0x118] sm:$0xff] }
 0x13c   : > { %2177 = vst [vmem:[#allocation16_spill] sm:$0xff] %v1758_v52  ;;  %v795_v4 = vmul.f32 %v1756_v51, %v1756_v51  ;;  %v794_v5 = vmul.f32 %v1758_v52, %v1758_v52  ;;  %v427_v7 = vpop.f32.mrb[14].mxu0 }
 0x13d   : > { %2178 = vst [vmem:[#allocation17_spill] sm:$0xff] %v1763_v62  ;;  %v838_v9 = vadd.f32 %v837_v40, %v793_v61  ;;  %v796_v10 = vmul.f32 %v1763_v62, %v1763_v62  ;;  %v1774_v12 = vadd.f32 %v669_v59, %v427_v7  ;;  %v588_v13 = vpop.f32.mrb[14].mxu1  ;;  %v429_v14 = vpop.f32.mrb[15].mxu0  ;;  %v679_v7 = vld [vmem:[%s1511_s6 + $0x130] sm:$0xff] }
 0x13e   : > { %v880_v15 = vadd.f32 %v879_v47, %v795_v4  ;;  %v859_v19 = vadd.f32 %v858_v48, %v794_v5  ;;  %v1776_v20 = vadd.f32 %v671_v2, %v588_v13  ;;  %v1778_v21 = vadd.f32 %v670_v3, %v429_v14  ;;  %v590_v23 = vpop.f32.mrb[15].mxu1  ;;  %v677_v2 = vld [vmem:[%s1511_s6 + $0x120] sm:$0xff]  ;;  %v680_v14 = vld [vmem:[%s1511_s6 + $0x138] sm:$0xff] }
 0x13f   : > { %v901_v27 = vadd.f32 %v900_v60, %v796_v10  ;;  %v797_v28 = vmul.f32 %v1774_v12, %v1774_v12  ;;  %v1783_v29 = vadd.f32 %v672_v8, %v590_v23  ;;  %v678_v8 = vld [vmem:[%s1511_s6 + $0x128] sm:$0xff] }
 0x140   : > { %2179 = vst [vmem:[#allocation18_spill] sm:$0xff] %v1778_v21  ;;  %v799_v34 = vmul.f32 %v1776_v20, %v1776_v20  ;;  %v798_v35 = vmul.f32 %v1778_v21, %v1778_v21  ;;  %v433_v38 = vpop.f32.mrb[16].mxu0 }
 0x141   : > { %2180 = vst [vmem:[#allocation19_spill] sm:$0xff] %v1783_v29  ;;  %v839_v40 = vadd.f32 %v838_v9, %v797_v28  ;;  %v800_v41 = vmul.f32 %v1783_v29, %v1783_v29  ;;  %v1794_v44 = vadd.f32 %v673_v26, %v433_v38  ;;  %v594_v45 = vpop.f32.mrb[16].mxu1  ;;  %v435_v47 = vpop.f32.mrb[17].mxu0  ;;  %v681_v38 = vld [vmem:[%s1511_s6 + $0x140] sm:$0xff] }
 0x142   : > { %v881_v48 = vadd.f32 %v880_v15, %v799_v34  ;;  %v860_v55 = vadd.f32 %v859_v19, %v798_v35  ;;  %v1796_v59 = vadd.f32 %v675_v32, %v594_v45  ;;  %v1798_v60 = vadd.f32 %v674_v33, %v435_v47  ;;  %v596_v61 = vpop.f32.mrb[17].mxu1  ;;  %v683_v45 = vld [vmem:[%s1511_s6 + $0x150] sm:$0xff]  ;;  %v682_v47 = vld [vmem:[%s1511_s6 + $0x148] sm:$0xff]  ;;  %v689_v29 = vld [vmem:[%s1511_s6 + $0x180] sm:$0xff] }
 0x143   : > { %v902_v3 = vadd.f32 %v901_v27, %v800_v41  ;;  %v801_v4 = vmul.f32 %v1794_v44, %v1794_v44  ;;  %v1803_v5 = vadd.f32 %v676_v39, %v596_v61 }
 0x144   : > { %2181 = vst [vmem:[#allocation20_spill] sm:$0xff] %v1798_v60  ;;  %v803_v9 = vmul.f32 %v1796_v59, %v1796_v59  ;;  %v802_v10 = vmul.f32 %v1798_v60, %v1798_v60  ;;  %v439_v13 = vpop.f32.mrb[18].mxu0 }
 0x145   : > { %2182 = vst [vmem:[#allocation21_spill] sm:$0xff] %v1803_v5  ;;  %v840_v15 = vadd.f32 %v839_v40, %v801_v4  ;;  %v804_v19 = vmul.f32 %v1803_v5, %v1803_v5  ;;  %v1814_v23 = vadd.f32 %v677_v2, %v439_v13  ;;  %v600_v26 = vpop.f32.mrb[18].mxu1  ;;  %v441_v27 = vpop.f32.mrb[19].mxu0  ;;  %v684_v2 = vld [vmem:[%s1511_s6 + $0x158] sm:$0xff] }
 0x146   : > { %v882_v28 = vadd.f32 %v881_v48, %v803_v9  ;;  %v861_v32 = vadd.f32 %v860_v55, %v802_v10  ;;  %v1816_v33 = vadd.f32 %v679_v7, %v600_v26  ;;  %v1818_v34 = vadd.f32 %v678_v8, %v441_v27  ;;  %v602_v35 = vpop.f32.mrb[19].mxu1  ;;  %v685_v27 = vld [vmem:[%s1511_s6 + $0x160] sm:$0xff] }
 0x147   : > { %v903_v39 = vadd.f32 %v902_v3, %v804_v19  ;;  %v805_v40 = vmul.f32 %v1814_v23, %v1814_v23  ;;  %v1823_v41 = vadd.f32 %v680_v14, %v602_v35 }
 0x148   : > { %2183 = vst [vmem:[#allocation22_spill] sm:$0xff] %v1818_v34  ;;  %v807_v61 = vmul.f32 %v1816_v33, %v1816_v33  ;;  %v806_v48 = vmul.f32 %v1818_v34, %v1818_v34  ;;  %v445_v55 = vpop.f32.mrb[20].mxu0 }
 0x149   : > { %2184 = vst [vmem:[#allocation23_spill] sm:$0xff] %v1823_v41  ;;  %v841_v4 = vadd.f32 %v840_v15, %v805_v40  ;;  %v808_v3 = vmul.f32 %v1823_v41, %v1823_v41  ;;  %v1834_v7 = vadd.f32 %v681_v38, %v445_v55  ;;  %v606_v8 = vpop.f32.mrb[20].mxu1  ;;  %v447_v9 = vpop.f32.mrb[21].mxu0  ;;  %v687_v41 = vld [vmem:[%s1511_s6 + $0x170] sm:$0xff]  ;;  %v686_v38 = vld [vmem:[%s1511_s6 + $0x168] sm:$0xff] }
 0x14a   : > { %v883_v10 = vadd.f32 %v882_v28, %v807_v61  ;;  %v862_v13 = vadd.f32 %v861_v32, %v806_v48  ;;  %v1836_v14 = vadd.f32 %v683_v45, %v606_v8  ;;  %v1838_v19 = vadd.f32 %v682_v47, %v447_v9  ;;  %v608_v26 = vpop.f32.mrb[21].mxu1  ;;  %v688_v45 = vld [vmem:[%s1511_s6 + $0x178] sm:$0xff] }
 0x14b   : > { %v904_v35 = vadd.f32 %v903_v39, %v808_v3  ;;  %v809_v15 = vmul.f32 %v1834_v7, %v1834_v7  ;;  %v1843_v40 = vadd.f32 %v684_v2, %v608_v26 }
 0x14c   : > { %2185 = vst [vmem:[#allocation24_spill] sm:$0xff] %v1838_v19  ;;  %v811_v55 = vmul.f32 %v1836_v14, %v1836_v14  ;;  %v810_v28 = vmul.f32 %v1838_v19, %v1838_v19  ;;  %v451_v32 = vpop.f32.mrb[22].mxu0 }
 0x14d   : > { %2186 = vst [vmem:[#allocation25_spill] sm:$0xff] %v1843_v40  ;;  %v842_v47 = vadd.f32 %v841_v4, %v809_v15  ;;  %v812_v39 = vmul.f32 %v1843_v40, %v1843_v40  ;;  %v1854_v61 = vadd.f32 %v685_v27, %v451_v32  ;;  %v612_v48 = vpop.f32.mrb[22].mxu1  ;;  %v453_v2 = vpop.f32.mrb[23].mxu0  ;;  %v691_v40 = vld [vmem:[%s1511_s6 + $0x190] sm:$0xff]  ;;  %v690_v27 = vld [vmem:[%s1511_s6 + $0x188] sm:$0xff] }
 0x14e   : > { %v884_v3 = vadd.f32 %v883_v10, %v811_v55  ;;  %v863_v8 = vadd.f32 %v862_v13, %v810_v28  ;;  %v1856_v9 = vadd.f32 %v687_v41, %v612_v48  ;;  %v1858_v26 = vadd.f32 %v686_v38, %v453_v2  ;;  %v614_v5 = vpop.f32.mrb[23].mxu1  ;;  %v692_v13 = vld [vmem:[%s1511_s6 + $0x198] sm:$0xff] }
 0x14f   : > { %v905_v62 = vadd.f32 %v904_v35, %v812_v39  ;;  %v813_v4 = vmul.f32 %v1854_v61, %v1854_v61  ;;  %v1863_v15 = vadd.f32 %v688_v45, %v614_v5 }
 0x150   : > { %2187 = vst [vmem:[#allocation26_spill] sm:$0xff] %v1858_v26  ;;  %v815_v32 = vmul.f32 %v1856_v9, %v1856_v9  ;;  %v814_v41 = vmul.f32 %v1858_v26, %v1858_v26  ;;  %v457_v10 = vpop.f32.mrb[24].mxu0 }
 0x151   : > { %2188 = vst [vmem:[#allocation27_spill] sm:$0xff] %v1863_v15  ;;  %v843_v38 = vadd.f32 %v842_v47, %v813_v4  ;;  %v816_v35 = vmul.f32 %v1863_v15, %v1863_v15  ;;  %v1874_v55 = vadd.f32 %v689_v29, %v457_v10  ;;  %v618_v5 = vpop.f32.mrb[24].mxu1  ;;  %v459_v28 = vpop.f32.mrb[25].mxu0  ;;  %v695_v15 = vld [vmem:[%s1511_s6 + $0x1b0] sm:$0xff]  ;;  %v694_v29 = vld [vmem:[%s1511_s6 + $0x1a8] sm:$0xff] }
 0x152   : > { %v885_v45 = vadd.f32 %v884_v3, %v815_v32  ;;  %v864_v39 = vadd.f32 %v863_v8, %v814_v41  ;;  %v1876_v48 = vadd.f32 %v691_v40, %v618_v5  ;;  %v1878_v2 = vadd.f32 %v690_v27, %v459_v28  ;;  %v620_v30 = vpop.f32.mrb[25].mxu1  ;;  %v696_v8 = vld [vmem:[%s1511_s6 + $0x1b8] sm:$0xff] }
 0x153   : > { %v906_v42 = vadd.f32 %v905_v62, %v816_v35  ;;  %v817_v47 = vmul.f32 %v1874_v55, %v1874_v55  ;;  %v1883_v4 = vadd.f32 %v692_v13, %v620_v30 }
 0x154   : > { %2189 = vst [vmem:[#allocation28_spill] sm:$0xff] %v1878_v2  ;;  %v819_v10 = vmul.f32 %v1876_v48, %v1876_v48  ;;  %v818_v40 = vmul.f32 %v1878_v2, %v1878_v2  ;;  %v463_v3 = vpop.f32.mrb[26].mxu0  ;;  %v701_v2 = vld [vmem:[%s1511_s6 + $0x1e0] sm:$0xff] }
 0x155   : > { %2190 = vst [vmem:[#allocation29_spill] sm:$0xff] %v1883_v4  ;;  %v844_v27 = vadd.f32 %v843_v38, %v817_v47  ;;  %v820_v62 = vmul.f32 %v1883_v4, %v1883_v4  ;;  %v1894_v32 = vadd.f32 %v693_v6, %v463_v3  ;;  %v624_v30 = vpop.f32.mrb[26].mxu1  ;;  %v465_v41 = vpop.f32.mrb[27].mxu0  ;;  %v699_v4 = vld [vmem:[%s1511_s6 + $0x1d0] sm:$0xff]  ;;  %v698_v6 = vld [vmem:[%s1511_s6 + $0x1c8] sm:$0xff] }
 0x156   : > { %v886_v13 = vadd.f32 %v885_v45, %v819_v10  ;;  %v865_v35 = vadd.f32 %v864_v39, %v818_v40  ;;  %v1896_v5 = vadd.f32 %v695_v15, %v624_v30  ;;  %v1898_v28 = vadd.f32 %v694_v29, %v465_v41  ;;  %v626_v22 = vpop.f32.mrb[27].mxu1  ;;  %v700_v39 = vld [vmem:[%s1511_s6 + $0x1d8] sm:$0xff] }
 0x157   : > { %v907_v53 = vadd.f32 %v906_v42, %v820_v62  ;;  %v821_v38 = vmul.f32 %v1894_v32, %v1894_v32  ;;  %v1903_v47 = vadd.f32 %v696_v8, %v626_v22 }
 0x158   : > { %2191 = vst [vmem:[#allocation30_spill] sm:$0xff] %v1898_v28  ;;  %v823_v3 = vmul.f32 %v1896_v5, %v1896_v5  ;;  %v822_v15 = vmul.f32 %v1898_v28, %v1898_v28  ;;  %v469_v45 = vpop.f32.mrb[28].mxu0 }
 0x159   : > { %2192 = vst [vmem:[#allocation31_spill] sm:$0xff] %v1903_v47  ;;  %v845_v29 = vadd.f32 %v844_v27, %v821_v38  ;;  %v824_v42 = vmul.f32 %v1903_v47, %v1903_v47  ;;  %v1914_v10 = vadd.f32 %v697_v63, %v469_v45  ;;  %v630_v22 = vpop.f32.mrb[28].mxu1  ;;  %v471_v40 = vpop.f32.mrb[29].mxu0  ;;  %v703_v47 = vld [vmem:[%s1511_s6 + $0x1f0] sm:$0xff]  ;;  %v702_v63 = vld [vmem:[%s1511_s6 + $0x1e8] sm:$0xff] }
 0x15a   : > { %v887_v8 = vadd.f32 %v886_v13, %v823_v3  ;;  %v866_v62 = vadd.f32 %v865_v35, %v822_v15  ;;  %v1916_v30 = vadd.f32 %v699_v4, %v630_v22  ;;  %v1918_v41 = vadd.f32 %v698_v6, %v471_v40  ;;  %v632_v28 = vpop.f32.mrb[29].mxu1  ;;  %v704_v35 = vld [vmem:[%s1511_s6 + $0x1f8] sm:$0xff]  ;;  %s1964_s6 = scalar_lea.vmem [#allocation6], %s1168_s26  ;;  %s1210_s26 = sshll.u32 %s1421_s16, 9 }
 0x15b   : > { %v908_v26 = vadd.f32 %v907_v53, %v824_v42  ;;  %v825_v27 = vmul.f32 %v1914_v10, %v1914_v10  ;;  %v1923_v38 = vadd.f32 %v700_v39, %v632_v28  ;;  %s1067_s29 = sshll.u32 %s1964_s6, 4  ;;  %s2063_s5 = scalar_lea.hbm %s2136_s3, %s1210_s26  ;;  %s2073_s29 = int_to_ptr.vmem [resolvable:$true] %s1067_s29 }
 0x15c   : > { %2193 = vst [vmem:[#allocation32_spill] sm:$0xff] %v1918_v41  ;;  %v827_v45 = vmul.f32 %v1916_v30, %v1916_v30  ;;  %v826_v13 = vmul.f32 %v1918_v41, %v1918_v41  ;;  %v475_v4 = vpop.f32.mrb[30].mxu0  ;;  %s1303_s9 = scalar_lea.vmem %s2073_s29, 8192  ;;  %p1310_p4 = scmp.lt.s32.totalorder %s2073_s29, %s1308_s11 }
 0x15d   : > { %2194 = vst [vmem:[#allocation33_spill] sm:$0xff] %v1923_v38  ;;  %v846_v6 = vadd.f32 %v845_v29, %v825_v27  ;;  %v828_v3 = vmul.f32 %v1923_v38, %v1923_v38  ;;  %v1934_v53 = vadd.f32 %v701_v2, %v475_v4  ;;  %v636_v15 = vpop.f32.mrb[30].mxu1  ;;  %v477_v42 = vpop.f32.mrb[31].mxu0  ;;  %p1304_p6 = scmp.ne.s32.totalorder %s2073_s29, %s1303_s9  ;;  %p1311_p7 = scmp.lt.s32.totalorder %s1309_s17, %s1303_s9 }
 0x15e   : > { %v888_v28 = vadd.f32 %v887_v8, %v827_v45  ;;  %v867_v39 = vadd.f32 %v866_v62, %v826_v13  ;;  %v1936_v22 = vadd.f32 %v703_v47, %v636_v15  ;;  %v1938_v40 = vadd.f32 %v702_v63, %v477_v42  ;;  %v638_v19 = vpop.f32.mrb[31].mxu1 }
 0x15f   : > { %v909_v34 = vadd.f32 %v908_v26, %v828_v3  ;;  %v829_v41 = vmul.f32 %v1934_v53, %v1934_v53  ;;  %v1942_v60 = vadd.f32 %v704_v35, %v638_v19  ;;  %p1305_p0 = pnand %p1304_p6, %p2224_p11  ;;  %p1312_p8 = por %p1311_p7, %p1310_p4 }
 0x160   : > { %2195 = vst [vmem:[#allocation34_spill] sm:$0xff] %v1938_v40  ;;  %v831_v29 = vmul.f32 %v1936_v22, %v1936_v22  ;;  %v830_v2 = vmul.f32 %v1938_v40, %v1938_v40 }
 0x161   : > { %2196 = vst [vmem:[#allocation35_spill] sm:$0xff] %v1942_v60  ;;  %v847_v27 = vadd.f32 %v846_v6, %v829_v41  ;;  %v832_v47 = vmul.f32 %v1942_v60, %v1942_v60  ;;  %p1306_p3 = pneg %p1305_p0 }
 0x162   : > { %v889_v8 = vadd.f32 %v888_v28, %v831_v29  ;;  %v868_v62 = vadd.f32 %v867_v39, %v830_v2 }
 0x163   : > { %v848_v63 = vrot.slane %v847_v27, 4  ;;  %v910_v45 = vadd.f32 %v909_v34, %v832_v47  ;;  %p1313_p12 = pnand %p1312_p8, %p1306_p3 }
 0x164   : > { %v890_v26 = vrot.slane %v889_v8, 4  ;;  %v869_v13 = vrot.slane %v868_v62, 4 }
 0x165   : > { %v849_v4 = vadd.f32 %v848_v63, %v847_v27  ;;  %v911_v3 = vrot.slane %v910_v45, 4 }
 0x166   : > { %v891_v19 = vadd.f32 %v890_v26, %v889_v8  ;;  %v870_v35 = vadd.f32 %v869_v13, %v868_v62 }
 0x167   : > { %v850_v15 = vrot.slane %v849_v4, 2  ;;  %v912_v42 = vadd.f32 %v911_v3, %v910_v45 }
 0x168   : > { %v892_v38 = vrot.slane %v891_v19, 2  ;;  %v871_v21 = vrot.slane %v870_v35, 2 }
 0x169   : > { %v851_v52 = vadd.f32 %v850_v15, %v849_v4  ;;  %v913_v40 = vrot.slane %v912_v42, 2  ;;  %v2200_v15 = vld [vmem:[#allocation20_spill] sm:$0xff] }
 0x16a   : > { %v893_v41 = vadd.f32 %v892_v38, %v891_v19  ;;  %v872_v6 = vadd.f32 %v871_v21, %v870_v35 }
 0x16b   : > { %v852_v25 = vrot.slane %v851_v52, 1  ;;  %v914_v60 = vadd.f32 %v913_v40, %v912_v42  ;;  %v2201_v42 = vld [vmem:[#allocation22_spill] sm:$0xff] }
 0x16c   : > { %v894_v28 = vrot.slane %v893_v41, 1  ;;  %v873_v39 = vrot.slane %v872_v6, 1 }
 0x16d   : > { %v853_v29 = vadd.f32 %v852_v25, %v851_v52  ;;  %v915_v27 = vrot.slane %v914_v60, 1 }
 0x16e   : > { %v895_v34 = vadd.f32 %v894_v28, %v893_v41  ;;  %v874_v47 = vadd.f32 %v873_v39, %v872_v6  ;;  %v2202_v6 = vld [vmem:[#allocation24_spill] sm:$0xff]  ;;  %v2203_v39 = vld [vmem:[#allocation26_spill] sm:$0xff] }
 0x16f   : > { %v917_v2 = vmax.f32 %v853_v29, 1e-24  ;;  %v916_v62 = vadd.f32 %v915_v27, %v914_v60  ;;  %v2204_v29 = vld [vmem:[#allocation28_spill] sm:$0xff] }
 0x170   : > { %v919_v63 = vmax.f32 %v895_v34, 1e-24  ;;  %v918_v8 = vmax.f32 %v874_v47, 1e-24  ;;  %v2206_v27 = vld [vmem:[#allocation32_spill] sm:$0xff] }
 0x171   : > { %1267 = vrsqrt.f32 %v917_v2  ;;  %v920_v45 = vmax.f32 %v916_v62, 1e-24  ;;  %v2205_v2 = vld [vmem:[#allocation30_spill] sm:$0xff] }
 0x172   : > { %1269 = vrsqrt.f32 %v919_v63 }
 0x173   : > { %1271 = vrsqrt.f32 %v918_v8  ;;  %v2207_v8 = vld [vmem:[#allocation34_spill] sm:$0xff] }
 0x174   : > { %1273 = vrsqrt.f32 %v920_v45  ;;  %v2208_v45 = vld [vmem:[#allocation9_spill] sm:$0xff] }
 0x17b   : > { %v1268_v26 = vpop.eup %1267 }
 0x17c   : > { %v925_v21 = vmul.f32 %v1268_v26, %v1635_v46  ;;  %v929_v38 = vmul.f32 %v1268_v26, %v1646_v54  ;;  %v933_v25 = vmul.f32 %v1268_v26, %v1674_v11  ;;  %v937_v52 = vmul.f32 %v1268_v26, %v1694_v31  ;;  %v1270_v40 = vpop.eup %1269 }
 0x17d   : > { %v941_v13 = vmul.f32 %v1268_v26, %v1714_v56  ;;  %v945_v4 = vmul.f32 %v1268_v26, %v1734_v18  ;;  %v949_v60 = vmul.f32 %v1268_v26, %v1754_v43  ;;  %v953_v3 = vmul.f32 %v1268_v26, %v1774_v12 }
 0x17e   : > { %v957_v19 = vmul.f32 %v1268_v26, %v1794_v44  ;;  %v961_v35 = vmul.f32 %v1268_v26, %v1814_v23  ;;  %v965_v46 = vmul.f32 %v1268_v26, %v1834_v7  ;;  %v969_v54 = vmul.f32 %v1268_v26, %v1854_v61  ;;  %989 = vst [vmem:[%s1964_s6] sm:$0xff] %v925_v21  ;;  %v1272_v7 = vpop.eup %1271  ;;  %v2209_v21 = vld [vmem:[#allocation10_spill] sm:$0xff] }
 0x17f   : > { %993 = vst [vmem:[%s1964_s6 + $0x20] sm:$0xff] %v929_v38  ;;  %997 = vst [vmem:[%s1964_s6 + $0x40] sm:$0xff] %v933_v25  ;;  %v973_v11 = vmul.f32 %v1268_v26, %v1874_v55  ;;  %v977_v31 = vmul.f32 %v1268_v26, %v1894_v32  ;;  %v981_v56 = vmul.f32 %v1268_v26, %v1914_v10  ;;  %v2210_v25 = vld [vmem:[#allocation11_spill] sm:$0xff] }
 0x180   : > { %1001 = vst [vmem:[%s1964_s6 + $0x60] sm:$0xff] %v937_v52  ;;  %v985_v18 = vmul.f32 %v1268_v26, %v1934_v53  ;;  %1005 = vst [vmem:[%s1964_s6 + $0x80] sm:$0xff] %v941_v13  ;;  %v927_v43 = vmul.f32 %v1270_v40, %v1639_v49  ;;  %v931_v12 = vmul.f32 %v1270_v40, %v1648_v57  ;;  %v2198_v53 = vld [vmem:[#allocation16_spill] sm:$0xff] }
 0x181   : > { %1009 = vst [vmem:[%s1964_s6 + $0xa0] sm:$0xff] %v945_v4  ;;  %1013 = vst [vmem:[%s1964_s6 + $0xc0] sm:$0xff] %v949_v60  ;;  %v935_v44 = vmul.f32 %v1270_v40, %v1676_v16  ;;  %v939_v23 = vmul.f32 %v1270_v40, %v1696_v36  ;;  %v943_v61 = vmul.f32 %v1270_v40, %v1716_v0  ;;  %v2212_v4 = vld [vmem:[#allocation13_spill] sm:$0xff] }
 0x182   : > { %1017 = vst [vmem:[%s1964_s6 + $0xe0] sm:$0xff] %v953_v3  ;;  %1021 = vst [vmem:[%s1964_s6 + $0x100] sm:$0xff] %v957_v19  ;;  %v947_v49 = vmul.f32 %v1270_v40, %v1736_v24  ;;  %v951_v57 = vmul.f32 %v1270_v40, %v1756_v51  ;;  %v955_v16 = vmul.f32 %v1270_v40, %v1776_v20  ;;  %v2213_v3 = vld [vmem:[#allocation15_spill] sm:$0xff] }
 0x183   : > { %1025 = vst [vmem:[%s1964_s6 + $0x120] sm:$0xff] %v961_v35  ;;  %1029 = vst [vmem:[%s1964_s6 + $0x140] sm:$0xff] %v965_v46  ;;  %v959_v36 = vmul.f32 %v1270_v40, %v1796_v59  ;;  %v963_v55 = vmul.f32 %v1270_v40, %v1816_v33  ;;  %v967_v32 = vmul.f32 %v1270_v40, %v1836_v14  ;;  %v2214_v35 = vld [vmem:[#allocation17_spill] sm:$0xff] }
 0x184   : > { %1033 = vst [vmem:[%s1964_s6 + $0x160] sm:$0xff] %v969_v54  ;;  %1037 = vst [vmem:[%s1964_s6 + $0x180] sm:$0xff] %v973_v11  ;;  %v971_v0 = vmul.f32 %v1270_v40, %v1856_v9  ;;  %v975_v24 = vmul.f32 %v1270_v40, %v1876_v48  ;;  %v979_v51 = vmul.f32 %v1270_v40, %v1896_v5  ;;  %v1274_v5 = vpop.eup %1273  ;;  %v2215_v54 = vld [vmem:[#allocation19_spill] sm:$0xff] }
 0x185   : > { %1041 = vst [vmem:[%s1964_s6 + $0x1a0] sm:$0xff] %v977_v31  ;;  %1045 = vst [vmem:[%s1964_s6 + $0x1c0] sm:$0xff] %v981_v56  ;;  %v983_v20 = vmul.f32 %v1270_v40, %v1916_v30  ;;  %v987_v59 = vmul.f32 %v1270_v40, %v1936_v22  ;;  %v926_v33 = vmul.f32 %v1272_v7, %v1641_v50  ;;  %v2197_v30 = vld [vmem:[#allocation14_spill] sm:$0xff]  ;;  %v2211_v40 = vld [vmem:[#allocation12_spill] sm:$0xff] }
 0x186   : > { %1049 = vst [vmem:[%s1964_s6 + $0x1e0] sm:$0xff] %v985_v18  ;;  %991 = vst [vmem:[%s1964_s6 + $0x10] sm:$0xff] %v927_v43  ;;  %v930_v14 = vmul.f32 %v1272_v7, %v1650_v58  ;;  %v934_v9 = vmul.f32 %v1272_v7, %v1678_v17  ;;  %v938_v48 = vmul.f32 %v1272_v7, %v1698_v37  ;;  %v2199_v22 = vld [vmem:[#allocation18_spill] sm:$0xff]  ;;  %v2216_v31 = vld [vmem:[#allocation21_spill] sm:$0xff] }
 0x187   : > { %995 = vst [vmem:[%s1964_s6 + $0x30] sm:$0xff] %v931_v12  ;;  %999 = vst [vmem:[%s1964_s6 + $0x50] sm:$0xff] %v935_v44  ;;  %v942_v10 = vmul.f32 %v1272_v7, %v1718_v1  ;;  %v946_v50 = vmul.f32 %v1272_v7, %v2197_v30  ;;  %v950_v58 = vmul.f32 %v1272_v7, %v2198_v53  ;;  %v2217_v18 = vld [vmem:[#allocation23_spill] sm:$0xff]  ;;  %v2218_v12 = vld [vmem:[#allocation25_spill] sm:$0xff] }
 0x188   : > { %1003 = vst [vmem:[%s1964_s6 + $0x70] sm:$0xff] %v939_v23  ;;  %1007 = vst [vmem:[%s1964_s6 + $0x90] sm:$0xff] %v943_v61  ;;  %v954_v17 = vmul.f32 %v1272_v7, %v2199_v22  ;;  %v958_v37 = vmul.f32 %v1272_v7, %v2200_v15  ;;  %v962_v41 = vmul.f32 %v1272_v7, %v2201_v42  ;;  %v2219_v23 = vld [vmem:[#allocation27_spill] sm:$0xff]  ;;  %v2220_v61 = vld [vmem:[#allocation29_spill] sm:$0xff] }
 0x189   : > { %1011 = vst [vmem:[%s1964_s6 + $0xb0] sm:$0xff] %v947_v49  ;;  %1015 = vst [vmem:[%s1964_s6 + $0xd0] sm:$0xff] %v951_v57  ;;  %v966_v28 = vmul.f32 %v1272_v7, %v2202_v6  ;;  %v970_v1 = vmul.f32 %v1272_v7, %v2203_v39  ;;  %v974_v34 = vmul.f32 %v1272_v7, %v2204_v29  ;;  %v2221_v57 = vld [vmem:[#allocation31_spill] sm:$0xff] }
 0x18a   : > { %1019 = vst [vmem:[%s1964_s6 + $0xf0] sm:$0xff] %v955_v16  ;;  %1023 = vst [vmem:[%s1964_s6 + $0x110] sm:$0xff] %v959_v36  ;;  %v978_v47 = vmul.f32 %v1272_v7, %v2205_v2  ;;  %v982_v63 = vmul.f32 %v1272_v7, %v2206_v27  ;;  %v986_v62 = vmul.f32 %v1272_v7, %v2207_v8  ;;  %v2222_v36 = vld [vmem:[#allocation33_spill] sm:$0xff] }
 0x18b   : > { %1027 = vst [vmem:[%s1964_s6 + $0x130] sm:$0xff] %v963_v55  ;;  %1031 = vst [vmem:[%s1964_s6 + $0x150] sm:$0xff] %v967_v32  ;;  %v928_v26 = vmul.f32 %v1274_v5, %v2208_v45  ;;  %v932_v38 = vmul.f32 %v1274_v5, %v2209_v21  ;;  %v936_v52 = vmul.f32 %v1274_v5, %v2210_v25  ;;  %v2223_v32 = vld [vmem:[#allocation35_spill] sm:$0xff] }
 0x18c   : > { %1035 = vst [vmem:[%s1964_s6 + $0x170] sm:$0xff] %v971_v0  ;;  %1039 = vst [vmem:[%s1964_s6 + $0x190] sm:$0xff] %v975_v24  ;;  %v940_v13 = vmul.f32 %v1274_v5, %v2211_v40  ;;  %v944_v60 = vmul.f32 %v1274_v5, %v2212_v4  ;;  %v948_v19 = vmul.f32 %v1274_v5, %v2213_v3 }
 0x18d   : > { %1043 = vst [vmem:[%s1964_s6 + $0x1b0] sm:$0xff] %v979_v51  ;;  %1047 = vst [vmem:[%s1964_s6 + $0x1d0] sm:$0xff] %v983_v20  ;;  %v952_v46 = vmul.f32 %v1274_v5, %v2214_v35  ;;  %v956_v11 = vmul.f32 %v1274_v5, %v2215_v54  ;;  %v960_v56 = vmul.f32 %v1274_v5, %v2216_v31 }
 0x18e   : > { %1051 = vst [vmem:[%s1964_s6 + $0x1f0] sm:$0xff] %v987_v59  ;;  %990 = vst [vmem:[%s1964_s6 + $0x8] sm:$0xff] %v926_v33  ;;  %v964_v43 = vmul.f32 %v1274_v5, %v2217_v18  ;;  %v968_v44 = vmul.f32 %v1274_v5, %v2218_v12  ;;  %v972_v7 = vmul.f32 %v1274_v5, %v2219_v23 }
 0x18f   : > { %994 = vst [vmem:[%s1964_s6 + $0x28] sm:$0xff] %v930_v14  ;;  %998 = vst [vmem:[%s1964_s6 + $0x48] sm:$0xff] %v934_v9  ;;  %v976_v49 = vmul.f32 %v1274_v5, %v2220_v61  ;;  %v980_v16 = vmul.f32 %v1274_v5, %v2221_v57  ;;  %v984_v55 = vmul.f32 %v1274_v5, %v2222_v36 }
 0x190   : > { %1002 = vst [vmem:[%s1964_s6 + $0x68] sm:$0xff] %v938_v48  ;;  %1006 = vst [vmem:[%s1964_s6 + $0x88] sm:$0xff] %v942_v10  ;;  %v988_v0 = vmul.f32 %v1274_v5, %v2223_v32 }
 0x191   : > { %1010 = vst [vmem:[%s1964_s6 + $0xa8] sm:$0xff] %v946_v50  ;;  %1014 = vst [vmem:[%s1964_s6 + $0xc8] sm:$0xff] %v950_v58 }
 0x192   : > { %1018 = vst [vmem:[%s1964_s6 + $0xe8] sm:$0xff] %v954_v17  ;;  %1022 = vst [vmem:[%s1964_s6 + $0x108] sm:$0xff] %v958_v37 }
 0x193   : > { %1026 = vst [vmem:[%s1964_s6 + $0x128] sm:$0xff] %v962_v41  ;;  %1030 = vst [vmem:[%s1964_s6 + $0x148] sm:$0xff] %v966_v28 }
 0x194   : > { %1034 = vst [vmem:[%s1964_s6 + $0x168] sm:$0xff] %v970_v1  ;;  %1038 = vst [vmem:[%s1964_s6 + $0x188] sm:$0xff] %v974_v34 }
 0x195   : > { %1042 = vst [vmem:[%s1964_s6 + $0x1a8] sm:$0xff] %v978_v47  ;;  %1046 = vst [vmem:[%s1964_s6 + $0x1c8] sm:$0xff] %v982_v63 }
 0x196   : > { %1050 = vst [vmem:[%s1964_s6 + $0x1e8] sm:$0xff] %v986_v62  ;;  %992 = vst [vmem:[%s1964_s6 + $0x18] sm:$0xff] %v928_v26 }
 0x197   : > { %996 = vst [vmem:[%s1964_s6 + $0x38] sm:$0xff] %v932_v38  ;;  %1000 = vst [vmem:[%s1964_s6 + $0x58] sm:$0xff] %v936_v52 }
 0x198   : > { %1004 = vst [vmem:[%s1964_s6 + $0x78] sm:$0xff] %v940_v13  ;;  %1008 = vst [vmem:[%s1964_s6 + $0x98] sm:$0xff] %v944_v60 }
 0x199   : > { %1012 = vst [vmem:[%s1964_s6 + $0xb8] sm:$0xff] %v948_v19  ;;  %1016 = vst [vmem:[%s1964_s6 + $0xd8] sm:$0xff] %v952_v46 }
 0x19a   : > { %1020 = vst [vmem:[%s1964_s6 + $0xf8] sm:$0xff] %v956_v11  ;;  %1024 = vst [vmem:[%s1964_s6 + $0x118] sm:$0xff] %v960_v56 }
 0x19b   : > { %1028 = vst [vmem:[%s1964_s6 + $0x138] sm:$0xff] %v964_v43  ;;  %1032 = vst [vmem:[%s1964_s6 + $0x158] sm:$0xff] %v968_v44 }
 0x19c   : > { %1036 = vst [vmem:[%s1964_s6 + $0x178] sm:$0xff] %v972_v7  ;;  %1040 = vst [vmem:[%s1964_s6 + $0x198] sm:$0xff] %v976_v49 }
 0x19d   : > { %1044 = vst [vmem:[%s1964_s6 + $0x1b8] sm:$0xff] %v980_v16  ;;  %1048 = vst [vmem:[%s1964_s6 + $0x1d8] sm:$0xff] %v984_v55 }
 0x19e   : > { %1052 = vst [vmem:[%s1964_s6 + $0x1f8] sm:$0xff] %v988_v0 }
 0x19f   : > { %1316 = shalt.err (!%p1313_p12)
}
 0x1a0   : > { %s1317_s19 = scalar_lea.hbm %s2063_s5, 8192  ;;  %s1321_s7 = scalar_lea.hbm %s2136_s3, 16384 }
 0x1a1   : > { %p1318_p13 = scmp.ne.s32.totalorder %s2063_s5, %s1317_s19  ;;  %p1322_p5 = scmp.lt.u32.totalorder %s2063_s5, %s2136_s3 }
 0x1a2   : > { %p1323_p9 = scmp.lt.u32.totalorder %s1321_s7, %s1317_s19  ;;  %p1325_p6 = scmp.lt.u32.totalorder %s1317_s19, %s2063_s5 }
 0x1a3   : > { %p1319_p1 = pnand %p1318_p13, %p2224_p11 }
 0x1a4   : > { %p1324_p10 = por %p1323_p9, %p1322_p5 }
 0x1a5   : > { %p1320_p2 = pneg %p1319_p1 }
 0x1a6   : > { %p1326_p0 = por %p1325_p6, %p1324_p10 }
 0x1a8   : > { %p1327_p3 = pnand %p1326_p0, %p1320_p2 }
 0x1aa   : > { %1330 = shalt.err (!%p1327_p3)
}
 0x1ab   : > { %s1377_s28 = smov 512   ;;  %s1378_s6 = smov 1024  }
 0x1ac   : > { %s1379_s26 = smov 32  }
 0x1ad   : > { %1221 = dma.vmem_to_hbm [thread:$0]  (%p2224_p11), %s2073_s29, 8192, %s2063_s5, %s1054_s8, %s1377_s28, %s1378_s6, %s1379_s26  }
 0x1ae PF: > { %s1082_s16 = sand.u32 1, %s1357_s12   ;;  %p2225_p4 = scmp.ne.s32.totalorder %s2169_s25, 0 }
 0x1af   : > { %p2226_p7 = scmp.ge.s32.totalorder %s1369_s15, 2  ;;  %s1083_s30 = scalar_lea.sflag [#allocation4], %s1082_s16 }
 0x1b1   : > { %p1224_p8 = pnand %p2226_p7, %p2225_p4 }
 0x1b3   : > { %1352 = dma.done.wait (!%p1224_p8), %s1083_s30, 8192  }
 0x1b4   : > { %1354 = vsyncadd (!%p1224_p8), %s1083_s30, 4294959104  ;;  %p16_p12 = scmp.ge.s32.totalorder %s1425_s18, 4   ;;  %s2227_s12 = smov %s1361_s13 }
 0x1b5   : > { %s2228_s13 = smov %s1365_s14  ;;  %s2229_s14 = smov %s1437_s21 }
 0x1b6   : > { %s2230_s15 = smov %s1425_s18  ;;  %18 = sbr.rel (!%p16_p12) target bundleno = 5 (0x5), region = 108 }
 0x1bd   :  { %1088 = vsyncpa [#allocation3], 1 }
 0x1be   :  { %1090 = vsyncpa [#allocation3 + $0x1], 1 }
 0x1bf   :  { %1091 = vsyncpa [#allocation4], 1 }
 0x1c0   :  { %1093 = vsyncpa [#allocation4 + $0x1], 1 }

</bundles_post_ra>
